<compile_context>
chip_gen: v6e
topology: v6e:2x2x1
jax: 0.10.0
libtpu: 0.0.40
codegen_flags: <defaults>
</compile_context>

<pallas_src>
import functools

import jax
import jax.numpy as jnp
from jax.experimental import pallas as pl
from jax.experimental.pallas import tpu as pltpu


def _mhsa_kernel(x_ref, wqkv_ref, bqkv_ref, wo_ref, o_ref, *, num_heads):
    Bt, N, E = x_ref.shape
    H = num_heads
    hd = E // H
    G = Bt * H

    x = x_ref[...]                                              # (Bt, N, E)

    # Replicate rows over heads and over the stacked {q,k,v} axis so the fused
    # projection is a single leading-batch batched matmul. Broadcasts / leading
    # reshapes never touch the minor (sublane, lane) dims -> no relayout.
    x_h = jnp.broadcast_to(x[:, None], (Bt, H, N, E)).reshape(G, N, E)
    x_s = jnp.broadcast_to(x_h[None], (3, G, N, E)).reshape(3 * G, N, E)

    # Fused per-head Q/K/V projection (softmax scale pre-folded into Q third).
    qkv = jnp.einsum("gne,ged->gnd", x_s, wqkv_ref[...],
                     preferred_element_type=jnp.float32) + bqkv_ref[...]
    q = qkv[:G]                                                 # (G, N, hd)
    k = qkv[G:2 * G]                                            # (G, N, hd)
    v = qkv[2 * G:]                                             # (G, N, hd)

    # Scaled dot-product attention, batched over (batch row, head).
    scores = jnp.einsum("gnd,gmd->gnm", q, k,
                        preferred_element_type=jnp.float32)     # (G, N, N)
    m = jnp.max(scores, axis=-1, keepdims=True)
    e = jnp.exp(scores - m)
    s = jnp.sum(e, axis=-1, keepdims=True)
    w = e * pl.reciprocal(s, approx=True)                       # softmax weights

    ctx = jnp.einsum("gnm,gmd->gnd", w, v,
                     preferred_element_type=jnp.float32)        # (G, N, hd)

    # Per-head output projection, summed over heads (no concatenate).
    proj = jnp.einsum("gnd,gde->gne", ctx, wo_ref[...],
                      preferred_element_type=jnp.float32)       # (G, N, E)
    proj = proj.reshape(Bt, H, N, E)
    out = proj[:, 0]
    for h in range(1, H):                                       # H-1 VPU adds
        out = out + proj[:, h]
    o_ref[...] = out.astype(o_ref.dtype)


def _pack_params(params, *, num_heads, block_b):
    """Fuse & head-split weights in the wrapper (free, outside the kernel)."""
    E = params["wq"].shape[0]
    H = num_heads
    hd = E // H
    scale = float(hd) ** -0.5

    def split_heads_w(w):                       # (E, E) -> (H, E, hd)
        return w.reshape(E, H, hd).transpose(1, 0, 2)

    def split_heads_b(b):                       # (1, E) -> (H, 1, hd)
        return b.reshape(H, hd)[:, None, :]

    w_qkv = jnp.stack([split_heads_w(params["wq"] * scale),
                       split_heads_w(params["wk"]),
                       split_heads_w(params["wv"])], axis=0)     # (3, H, E, hd)
    b_qkv = jnp.stack([split_heads_b(params["bq"] * scale),
                       split_heads_b(params["bk"]),
                       split_heads_b(params["bv"])], axis=0)     # (3, H, 1, hd)

    # Tile over the batch block so leading index order (s, b, h) matches the
    # kernel's broadcast of x.
    w_qkv = jnp.broadcast_to(w_qkv[:, None], (3, block_b, H, E, hd))
    w_qkv = w_qkv.reshape(3 * block_b * H, E, hd)
    b_qkv = jnp.broadcast_to(b_qkv[:, None], (3, block_b, H, 1, hd))
    b_qkv = b_qkv.reshape(3 * block_b * H, 1, hd)

    w_out = params["wo"].reshape(H, hd, E)                       # rows per head
    w_out = jnp.broadcast_to(w_out[None], (block_b, H, hd, E))
    w_out = w_out.reshape(block_b * H, hd, E)
    return w_qkv, b_qkv, w_out


def mhsa_pallas(x, params, *, num_heads, block_b=None):
    """x: (B, N, E) float32.  params: dict of (already transposed) weights."""
    B, N, E = x.shape
    H = num_heads
    hd = E // H
    if block_b is None:
        block_b = B                      # fold the whole batch: grid=(1,)
    assert B % block_b == 0
    G = block_b * H
    G3 = 3 * G

    w_qkv, b_qkv, w_out = _pack_params(params, num_heads=H, block_b=block_b)

    kernel = functools.partial(_mhsa_kernel, num_heads=H)

    return pl.pallas_call(
        kernel,
        out_shape=jax.ShapeDtypeStruct((B, N, E), x.dtype),
        grid_spec=pltpu.PrefetchScalarGridSpec(
            num_scalar_prefetch=0,
            grid=(B // block_b,),
            in_specs=[
                pl.BlockSpec((block_b, N, E), lambda i: (i, 0, 0)),  # x
                pl.BlockSpec((G3, E, hd), lambda i: (0, 0, 0)),      # fused Wqkv
                pl.BlockSpec((G3, 1, hd), lambda i: (0, 0, 0)),      # fused bqkv
                pl.BlockSpec((G, hd, E), lambda i: (0, 0, 0)),       # Wo per head
            ],
            out_specs=pl.BlockSpec((block_b, N, E), lambda i: (i, 0, 0)),
        ),
        compiler_params=pltpu.CompilerParams(
            dimension_semantics=("parallel",)),
    )(x, w_qkv, b_qkv, w_out)


def mhsa_reference(x, params, *, num_heads):
    """Pure-JAX reference matching the PyTorch forward (eval mode)."""
    B, N, E = x.shape
    hd = E // num_heads
    scale = float(hd) ** -0.5

    q = x @ params["wq"] + params["bq"][0]
    k = x @ params["wk"] + params["bk"][0]
    v = x @ params["wv"] + params["bv"][0]

    def split(t):  # (B, N, E) -> (B, H, N, hd)
        return t.reshape(B, N, num_heads, hd).transpose(0, 2, 1, 3)

    q, k, v = split(q), split(k), split(v)
    scores = jnp.einsum("bhnd,bhmd->bhnm", q, k) * scale
    w = jax.nn.softmax(scores, axis=-1)
    out = jnp.einsum("bhnm,bhmd->bhnd", w, v)
    out = out.transpose(0, 2, 1, 3).reshape(B, N, E)
    return out @ params["wo"]


def init_params(key, embed_dim):
    """Deterministic parameter init. Weights stored pre-transposed (in, out)."""
    ks = jax.random.split(key, 7)
    std = 1.0 / jnp.sqrt(embed_dim)
    return {
        "wq": jax.random.normal(ks[0], (embed_dim, embed_dim), jnp.float32) * std,
        "bq": jax.random.normal(ks[1], (1, embed_dim), jnp.float32) * std,
        "wk": jax.random.normal(ks[2], (embed_dim, embed_dim), jnp.float32) * std,
        "bk": jax.random.normal(ks[3], (1, embed_dim), jnp.float32) * std,
        "wv": jax.random.normal(ks[4], (embed_dim, embed_dim), jnp.float32) * std,
        "bv": jax.random.normal(ks[5], (1, embed_dim), jnp.float32) * std,
        "wo": jax.random.normal(ks[6], (embed_dim, embed_dim), jnp.float32) * std,
    }


if __name__ == "__main__":
    B, N, E, H = 2, 8, 32, 4   # batch, seq, embed_dim, num_heads

    key = jax.random.PRNGKey(0)
    k_x, k_p = jax.random.split(key)
    x = jax.random.normal(k_x, (B, N, E), jnp.float32)
    params = init_params(k_p, E)

    out = mhsa_pallas(x, params, num_heads=H)
    out = jax.block_until_ready(out)

    ref = mhsa_reference(x, params, num_heads=H)
    assert out.shape == (B, N, E)
    # Tolerance loosened slightly vs the exact-divide version because the
    # softmax denominator uses the EUP approximate reciprocal.
    assert jnp.allclose(out, ref, atol=2e-2, rtol=2e-2), (
        f"max abs err {jnp.max(jnp.abs(out - ref))}")

    print("KERNEL_OK")
</pallas_src>

<mosaic_0001>
module attributes {stable_mosaic.version = 11 : i64} {
  func.func @_mhsa_kernel(%arg0: i32, %arg1: memref<2x8x32xf32, #tpu.memory_space<vmem>>, %arg2: memref<24x32x8xf32, #tpu.memory_space<vmem>>, %arg3: memref<24x1x8xf32, #tpu.memory_space<vmem>>, %arg4: memref<8x8x32xf32, #tpu.memory_space<vmem>>, %arg5: memref<2x8x32xf32, #tpu.memory_space<vmem>>) attributes {dimension_semantics = [#tpu.dimension_semantics<parallel>], iteration_bounds = array<i64: 1>, scalar_prefetch = 0 : i64, scratch_operands = 0 : i64, tpu.core_type = #tpu.core_type<tc>, window_params = [{transform_indices = @transform_0, window_bounds = array<i64: 2, 8, 32>}, {pipeline_mode = #tpu.pipeline_mode<synchronous>, transform_indices = @transform_1, window_bounds = array<i64: 24, 32, 8>}, {pipeline_mode = #tpu.pipeline_mode<synchronous>, transform_indices = @transform_2, window_bounds = array<i64: 24, 1, 8>}, {pipeline_mode = #tpu.pipeline_mode<synchronous>, transform_indices = @transform_3, window_bounds = array<i64: 8, 8, 32>}, {transform_indices = @transform_4, window_bounds = array<i64: 2, 8, 32>}]} {
    %c0 = arith.constant 0 : index
    %c0_0 = arith.constant 0 : index
    %c0_1 = arith.constant 0 : index
    %0 = vector.load %arg1[%c0, %c0_0, %c0_1] : memref<2x8x32xf32, #tpu.memory_space<vmem>>, vector<2x8x32xf32>
    %1 = vector.shape_cast %0 : vector<2x8x32xf32> to vector<2x1x8x32xf32>
    %2 = vector.shape_cast %1 : vector<2x1x8x32xf32> to vector<2x1x8x32xf32>
    %3 = vector.broadcast %2 : vector<2x1x8x32xf32> to vector<2x4x8x32xf32>
    %4 = vector.shape_cast %3 : vector<2x4x8x32xf32> to vector<8x8x32xf32>
    %5 = vector.shape_cast %4 : vector<8x8x32xf32> to vector<1x8x8x32xf32>
    %6 = vector.shape_cast %5 : vector<1x8x8x32xf32> to vector<1x8x8x32xf32>
    %7 = vector.broadcast %6 : vector<1x8x8x32xf32> to vector<3x8x8x32xf32>
    %8 = vector.shape_cast %7 : vector<3x8x8x32xf32> to vector<24x8x32xf32>
    %c0_2 = arith.constant 0 : index
    %c0_3 = arith.constant 0 : index
    %c0_4 = arith.constant 0 : index
    %9 = vector.load %arg2[%c0_2, %c0_3, %c0_4] : memref<24x32x8xf32, #tpu.memory_space<vmem>>, vector<24x32x8xf32>
    "tpu.trace_start"() <{level = 10 : i32, message = "gne,ged->gnd"}> : () -> ()
    %cst = arith.constant dense<0.000000e+00> : vector<24x8x8xf32>
    %10 = tpu.matmul %8, %9, %cst {dimension_numbers = #tpu.dot_dimension_numbers<[2], [1], [1], [2], [0, 0, 0, 1, 1, 2], [0], [0]>} : vector<24x8x32xf32>, vector<24x32x8xf32>, vector<24x8x8xf32> -> vector<24x8x8xf32>
    "tpu.trace_stop"() : () -> ()
    %c0_5 = arith.constant 0 : index
    %c0_6 = arith.constant 0 : index
    %c0_7 = arith.constant 0 : index
    %11 = vector.load %arg3[%c0_5, %c0_6, %c0_7] : memref<24x1x8xf32, #tpu.memory_space<vmem>>, vector<24x1x8xf32>
    %12 = vector.broadcast %11 : vector<24x1x8xf32> to vector<24x8x8xf32>
    %13 = arith.addf %10, %12 : vector<24x8x8xf32>
    %14 = vector.extract_strided_slice %13 {offsets = [0, 0, 0], sizes = [8, 8, 8], strides = [1, 1, 1]} : vector<24x8x8xf32> to vector<8x8x8xf32>
    %15 = vector.extract_strided_slice %13 {offsets = [8, 0, 0], sizes = [8, 8, 8], strides = [1, 1, 1]} : vector<24x8x8xf32> to vector<8x8x8xf32>
    %16 = vector.extract_strided_slice %13 {offsets = [16, 0, 0], sizes = [8, 8, 8], strides = [1, 1, 1]} : vector<24x8x8xf32> to vector<8x8x8xf32>
    "tpu.trace_start"() <{level = 10 : i32, message = "gnd,gmd->gnm"}> : () -> ()
    %cst_8 = arith.constant dense<0.000000e+00> : vector<8x8x8xf32>
    %17 = tpu.matmul %14, %15, %cst_8 {dimension_numbers = #tpu.dot_dimension_numbers<[2], [2], [1], [1], [0, 0, 0, 1, 1, 1], [0], [0]>} : vector<8x8x8xf32>, vector<8x8x8xf32>, vector<8x8x8xf32> -> vector<8x8x8xf32>
    "tpu.trace_stop"() : () -> ()
    %cst_9 = arith.constant dense<0xFF800000> : vector<8x8xf32>
    %18 = vector.multi_reduction <maximumf>, %17, %cst_9 [2] : vector<8x8x8xf32> to vector<8x8xf32>
    %19 = vector.shape_cast %18 : vector<8x8xf32> to vector<8x8x1xf32>
    %20 = vector.broadcast %19 : vector<8x8x1xf32> to vector<8x8x8xf32>
    %21 = arith.subf %17, %20 : vector<8x8x8xf32>
    %22 = math.exp %21 : vector<8x8x8xf32>
    %cst_10 = arith.constant dense<0.000000e+00> : vector<8x8xf32>
    %23 = vector.multi_reduction <add>, %22, %cst_10 [2] : vector<8x8x8xf32> to vector<8x8xf32>
    %24 = vector.shape_cast %23 : vector<8x8xf32> to vector<8x8x1xf32>
    %25 = tpu.reciprocal %24 {approx = true} : vector<8x8x1xf32> -> vector<8x8x1xf32>
    %26 = vector.broadcast %25 : vector<8x8x1xf32> to vector<8x8x8xf32>
    %27 = arith.mulf %22, %26 : vector<8x8x8xf32>
    "tpu.trace_start"() <{level = 10 : i32, message = "gnm,gmd->gnd"}> : () -> ()
    %cst_11 = arith.constant dense<0.000000e+00> : vector<8x8x8xf32>
    %28 = tpu.matmul %27, %16, %cst_11 {dimension_numbers = #tpu.dot_dimension_numbers<[2], [1], [1], [2], [0, 0, 0, 1, 1, 2], [0], [0]>} : vector<8x8x8xf32>, vector<8x8x8xf32>, vector<8x8x8xf32> -> vector<8x8x8xf32>
    "tpu.trace_stop"() : () -> ()
    %c0_12 = arith.constant 0 : index
    %c0_13 = arith.constant 0 : index
    %c0_14 = arith.constant 0 : index
    %29 = vector.load %arg4[%c0_12, %c0_13, %c0_14] : memref<8x8x32xf32, #tpu.memory_space<vmem>>, vector<8x8x32xf32>
    "tpu.trace_start"() <{level = 10 : i32, message = "gnd,gde->gne"}> : () -> ()
    %cst_15 = arith.constant dense<0.000000e+00> : vector<8x8x32xf32>
    %30 = tpu.matmul %28, %29, %cst_15 {dimension_numbers = #tpu.dot_dimension_numbers<[2], [1], [1], [2], [0, 0, 0, 1, 1, 2], [0], [0]>} : vector<8x8x8xf32>, vector<8x8x32xf32>, vector<8x8x32xf32> -> vector<8x8x32xf32>
    "tpu.trace_stop"() : () -> ()
    %31 = vector.shape_cast %30 : vector<8x8x32xf32> to vector<2x4x8x32xf32>
    %32 = vector.extract_strided_slice %31 {offsets = [0, 0, 0, 0], sizes = [2, 1, 8, 32], strides = [1, 1, 1, 1]} : vector<2x4x8x32xf32> to vector<2x1x8x32xf32>
    %33 = vector.shape_cast %32 : vector<2x1x8x32xf32> to vector<2x8x32xf32>
    %34 = vector.extract_strided_slice %31 {offsets = [0, 1, 0, 0], sizes = [2, 1, 8, 32], strides = [1, 1, 1, 1]} : vector<2x4x8x32xf32> to vector<2x1x8x32xf32>
    %35 = vector.shape_cast %34 : vector<2x1x8x32xf32> to vector<2x8x32xf32>
    %36 = arith.addf %33, %35 : vector<2x8x32xf32>
    %37 = vector.extract_strided_slice %31 {offsets = [0, 2, 0, 0], sizes = [2, 1, 8, 32], strides = [1, 1, 1, 1]} : vector<2x4x8x32xf32> to vector<2x1x8x32xf32>
    %38 = vector.shape_cast %37 : vector<2x1x8x32xf32> to vector<2x8x32xf32>
    %39 = arith.addf %36, %38 : vector<2x8x32xf32>
    %40 = vector.extract_strided_slice %31 {offsets = [0, 3, 0, 0], sizes = [2, 1, 8, 32], strides = [1, 1, 1, 1]} : vector<2x4x8x32xf32> to vector<2x1x8x32xf32>
    %41 = vector.shape_cast %40 : vector<2x1x8x32xf32> to vector<2x8x32xf32>
    %42 = arith.addf %39, %41 : vector<2x8x32xf32>
    %c0_16 = arith.constant 0 : index
    %c0_17 = arith.constant 0 : index
    %c0_18 = arith.constant 0 : index
    %43 = vector.load %arg5[%c0_16, %c0_17, %c0_18] : memref<2x8x32xf32, #tpu.memory_space<vmem>>, vector<2x8x32xf32>
    tpu.vector_store %arg5[%c0_16, %c0_17, %c0_18], %42 {strides = array<i32>} : memref<2x8x32xf32, #tpu.memory_space<vmem>>, vector<2x8x32xf32>,
    return
  }
  func.func @transform_0(%arg0: i32) -> (i32, i32, i32) {
    %c0_i32 = arith.constant 0 : i32
    %c0_i32_0 = arith.constant 0 : i32
    %c0_i32_1 = arith.constant 0 : i32
    return %arg0, %c0_i32, %c0_i32_0 : i32, i32, i32
  }
  func.func @transform_1(%arg0: i32) -> (i32, i32, i32) {
    %c0_i32 = arith.constant 0 : i32
    %c0_i32_0 = arith.constant 0 : i32
    %c0_i32_1 = arith.constant 0 : i32
    %c0_i32_2 = arith.constant 0 : i32
    return %c0_i32, %c0_i32_0, %c0_i32_1 : i32, i32, i32
  }
  func.func @transform_2(%arg0: i32) -> (i32, i32, i32) {
    %c0_i32 = arith.constant 0 : i32
    %c0_i32_0 = arith.constant 0 : i32
    %c0_i32_1 = arith.constant 0 : i32
    %c0_i32_2 = arith.constant 0 : i32
    return %c0_i32, %c0_i32_0, %c0_i32_1 : i32, i32, i32
  }
  func.func @transform_3(%arg0: i32) -> (i32, i32, i32) {
    %c0_i32 = arith.constant 0 : i32
    %c0_i32_0 = arith.constant 0 : i32
    %c0_i32_1 = arith.constant 0 : i32
    %c0_i32_2 = arith.constant 0 : i32
    return %c0_i32, %c0_i32_0, %c0_i32_1 : i32, i32, i32
  }
  func.func @transform_4(%arg0: i32) -> (i32, i32, i32) {
    %c0_i32 = arith.constant 0 : i32
    %c0_i32_0 = arith.constant 0 : i32
    %c0_i32_1 = arith.constant 0 : i32
    return %arg0, %c0_i32, %c0_i32_0 : i32, i32, i32
  }
}

</mosaic_0001>

<bundles_post_ra>
// kernel: tpu_custom_call.1
= control target key start
LH: loop header
LB: loop body
LE: loop exit
PB: predicated region body
PF: predicated region fallthrough
CT: control target
= control target key end

     0   :  { %v4559_v2 = vmov 0.0   ;;  %vm284_vm0 = vcmask 261120   ;;  %vm4560_vm1 = vmmov 0   ;;  %s5340_s0 = inlined_call_operand.vmem [shape: f32[2,8,32], index: 0, kind: input, shape index: {}]   ;;  %s5341_s1 = inlined_call_operand.vmem [shape: f32[24,32,8], index: 1, kind: input, shape index: {}]   ;;  %s5342_s2 = inlined_call_operand.vmem [shape: f32[24,1,8], index: 2, kind: input, shape index: {}]   ;;  %s5343_s3 = inlined_call_operand.vmem [shape: f32[8,8,32], index: 3, kind: input, shape index: {}]   ;;  %s5344_s4 = inlined_call_operand.hbm [shape: f32[2,8,32], index: 4, kind: output, shape index: {}]  }
   0x1   :  { %v23_v0 = vld [vmem:[%s5341_s1 + $0x18] sm:$0xff]  ;;  %4116 = vmatprep.subr.mxu0 %v4559_v2  ;;  %4127 = vmatprep.subr.mxu1 %v4559_v2  ;;  %v22_v3 = vld [vmem:[%s5341_s1 + $0x10] sm:$0xff]  ;;  %v21_v5 = vld [vmem:[%s5341_s1 + $0x8] sm:$0xff] }
   0x2   :  { %v27_v1 = vld [vmem:[%s5341_s1 + $0x38] sm:$0xff]  ;;  %v26_v4 = vld [vmem:[%s5341_s1 + $0x30] sm:$0xff]  ;;  %4117 = vmatpush3.msra.mxu0 %v23_v0  ;;  %v25_v6 = vld [vmem:[%s5341_s1 + $0x28] sm:$0xff]  ;;  %4124 = vmatprep.mubr.msk.f32.mxu0 %vm4560_vm1, %v4559_v2 }
   0x3   :  { %4128 = vmatpush3.msra.mxu1 %v27_v1  ;;  %4118 = vmatprep.subr.mxu0 %v4559_v2  ;;  %v20_v7 = vld [vmem:[%s5341_s1] sm:$0xff]  ;;  %v31_v10 = vld [vmem:[%s5341_s1 + $0x58] sm:$0xff]  ;;  %v30_v12 = vld [vmem:[%s5341_s1 + $0x50] sm:$0xff] }
   0x4   :  { %4129 = vmatprep.subr.mxu1 %v4559_v2  ;;  %4119 = vmatpush3.msra.mxu0 %v22_v3  ;;  %v24_v8 = vld [vmem:[%s5341_s1 + $0x20] sm:$0xff]  ;;  %v35_v11 = vld [vmem:[%s5341_s1 + $0x78] sm:$0xff]  ;;  %v34_v13 = vld [vmem:[%s5341_s1 + $0x70] sm:$0xff] }
   0x5   :  { %4130 = vmatpush3.msra.mxu1 %v26_v4  ;;  %4120 = vmatprep.subr.mxu0 %v4559_v2  ;;  %v4622_v9 = vld [vmem:[%s5340_s0] sm:$0xff]  ;;  %v29_v14 = vld [vmem:[%s5341_s1 + $0x48] sm:$0xff]  ;;  %v39_v18 = vld [vmem:[%s5341_s1 + $0x98] sm:$0xff] }
   0x6   :  { %4131 = vmatprep.subr.mxu1 %v4559_v2  ;;  %4121 = vmatpush3.msra.mxu0 %v21_v5  ;;  %v33_v15 = vld [vmem:[%s5341_s1 + $0x68] sm:$0xff]  ;;  %v28_v16 = vld [vmem:[%s5341_s1 + $0x40] sm:$0xff]  ;;  %v43_v19 = vld [vmem:[%s5341_s1 + $0xb8] sm:$0xff] }
   0x7   :  { %4132 = vmatpush3.msra.mxu1 %v25_v6  ;;  %4122 = vmatprep.subr.mxu0 %v4559_v2  ;;  %v32_v17 = vld [vmem:[%s5341_s1 + $0x60] sm:$0xff]  ;;  %v38_v20 = vld [vmem:[%s5341_s1 + $0x90] sm:$0xff] }
   0x8   :  { %4133 = vmatprep.subr.mxu1 %v4559_v2  ;;  %4123 = vmatpush3.msra.mxu0 %v20_v7  ;;  %v42_v21 = vld [vmem:[%s5341_s1 + $0xb0] sm:$0xff] }
   0x9   :  { %4134 = vmatpush3.msra.mxu1 %v24_v8  ;;  %4125 = vmatmul.mubr.msk.f32.vlgmr.msra.gmra.mxu0 %vm284_vm0, %v4622_v9 }
   0xa   :  { %4135 = vmatprep.mubr.msk.f32.mxu1 %vm4560_vm1, %v4559_v2  ;;  %4138 = vmatprep.subr.mxu0 %v4559_v2 }
   0xb   :  { %4149 = vmatprep.subr.mxu1 %v4559_v2  ;;  %4136 = vmatmul.mubr.msk.f32.vlgmr.msra.gmra.mxu1 %vm284_vm0, %v4622_v9 }
   0xc   :  { %4139 = vmatpush3.msra.mxu0 %v31_v10  ;;  %4150 = vmatpush3.msra.mxu1 %v35_v11 }
   0xd   :  { %4140 = vmatprep.subr.mxu0 %v4559_v2  ;;  %4151 = vmatprep.subr.mxu1 %v4559_v2 }
   0xe   :  { %4141 = vmatpush3.msra.mxu0 %v30_v12  ;;  %4152 = vmatpush3.msra.mxu1 %v34_v13 }
   0xf   :  { %4142 = vmatprep.subr.mxu0 %v4559_v2  ;;  %4153 = vmatprep.subr.mxu1 %v4559_v2 }
  0x10   :  { %4143 = vmatpush3.msra.mxu0 %v29_v14  ;;  %4154 = vmatpush3.msra.mxu1 %v33_v15 }
  0x11   :  { %4144 = vmatprep.subr.mxu0 %v4559_v2  ;;  %4155 = vmatprep.subr.mxu1 %v4559_v2 }
  0x12   :  { %4145 = vmatpush3.msra.mxu0 %v28_v16  ;;  %4146 = vmatprep.mubr.msk.f32.mxu0 %vm4560_vm1, %v4559_v2 }
  0x13   :  { %4156 = vmatpush3.msra.mxu1 %v32_v17  ;;  %4147 = vmatmul.mubr.msk.f32.vlgmr.msra.gmra.mxu0 %vm284_vm0, %v4622_v9 }
  0x14   :  { %4157 = vmatprep.mubr.msk.f32.mxu1 %vm4560_vm1, %v4559_v2  ;;  %4160 = vmatprep.subr.mxu0 %v4559_v2 }
  0x15   :  { %4171 = vmatprep.subr.mxu1 %v4559_v2  ;;  %4158 = vmatmul.mubr.msk.f32.vlgmr.msra.gmra.mxu1 %vm284_vm0, %v4622_v9 }
  0x16   :  { %4161 = vmatpush3.msra.mxu0 %v39_v18  ;;  %4172 = vmatpush3.msra.mxu1 %v43_v19 }
  0x17   :  { %9 = vsyncpa [#allocation3], 0  ;;  %4162 = vmatprep.subr.mxu0 %v4559_v2  ;;  %4173 = vmatprep.subr.mxu1 %v4559_v2  ;;  %v37_v22 = vld [vmem:[%s5341_s1 + $0x88] sm:$0xff]  ;;  %v36_v24 = vld [vmem:[%s5341_s1 + $0x80] sm:$0xff]  ;;  %vm1971_vm2 = vcmask 64512  }
  0x18   :  { %v41_v23 = vld [vmem:[%s5341_s1 + $0xa8] sm:$0xff]  ;;  %4163 = vmatpush3.msra.mxu0 %v38_v20  ;;  %4174 = vmatpush3.msra.mxu1 %v42_v21  ;;  %v40_v25 = vld [vmem:[%s5341_s1 + $0xa0] sm:$0xff]  ;;  %v47_v27 = vld [vmem:[%s5341_s1 + $0xd8] sm:$0xff] }
  0x19   :  { %4164 = vmatprep.subr.mxu0 %v4559_v2  ;;  %4175 = vmatprep.subr.mxu1 %v4559_v2  ;;  %v4707_v26 = vld [vmem:[%s5340_s0 + $0x8] sm:$0xff]  ;;  %v51_v28 = vld [vmem:[%s5341_s1 + $0xf8] sm:$0xff]  ;;  %v46_v29 = vld [vmem:[%s5341_s1 + $0xd0] sm:$0xff] }
  0x1a   :  { %4165 = vmatpush3.msra.mxu0 %v37_v22  ;;  %4176 = vmatpush3.msra.mxu1 %v41_v23  ;;  %v50_v30 = vld [vmem:[%s5341_s1 + $0xf0] sm:$0xff]  ;;  %v45_v31 = vld [vmem:[%s5341_s1 + $0xc8] sm:$0xff]  ;;  %v44_v33 = vld [vmem:[%s5341_s1 + $0xc0] sm:$0xff] }
  0x1b   :  { %4166 = vmatprep.subr.mxu0 %v4559_v2  ;;  %4177 = vmatprep.subr.mxu1 %v4559_v2  ;;  %v49_v32 = vld [vmem:[%s5341_s1 + $0xe8] sm:$0xff]  ;;  %v48_v34 = vld [vmem:[%s5341_s1 + $0xe0] sm:$0xff]  ;;  %v55_v35 = vld [vmem:[%s5341_s1 + $0x118] sm:$0xff] }
  0x1c   :  { %4167 = vmatpush3.msra.mxu0 %v36_v24  ;;  %4168 = vmatprep.mubr.msk.f32.mxu0 %vm4560_vm1, %v4559_v2  ;;  %v59_v36 = vld [vmem:[%s5341_s1 + $0x138] sm:$0xff]  ;;  %v54_v37 = vld [vmem:[%s5341_s1 + $0x110] sm:$0xff]  ;;  %v53_v39 = vld [vmem:[%s5341_s1 + $0x108] sm:$0xff] }
  0x1d   :  { %4178 = vmatpush3.msra.mxu1 %v40_v25  ;;  %4169 = vmatmul.mubr.msk.f32.vlgmr.msra.gmra.mxu0 %vm284_vm0, %v4707_v26  ;;  %v58_v38 = vld [vmem:[%s5341_s1 + $0x130] sm:$0xff]  ;;  %v57_v40 = vld [vmem:[%s5341_s1 + $0x128] sm:$0xff]  ;;  %v52_v41 = vld [vmem:[%s5341_s1 + $0x100] sm:$0xff] }
  0x1e   :  { %4179 = vmatprep.mubr.msk.f32.mxu1 %vm4560_vm1, %v4559_v2  ;;  %4182 = vmatprep.subr.mxu0 %v4559_v2  ;;  %v56_v42 = vld [vmem:[%s5341_s1 + $0x120] sm:$0xff]  ;;  %v63_v43 = vld [vmem:[%s5341_s1 + $0x158] sm:$0xff]  ;;  %v62_v45 = vld [vmem:[%s5341_s1 + $0x150] sm:$0xff] }
  0x1f   :  { %4193 = vmatprep.subr.mxu1 %v4559_v2  ;;  %4180 = vmatmul.mubr.msk.f32.vlgmr.msra.gmra.mxu1 %vm284_vm0, %v4707_v26  ;;  %v67_v44 = vld [vmem:[%s5341_s1 + $0x178] sm:$0xff]  ;;  %v66_v46 = vld [vmem:[%s5341_s1 + $0x170] sm:$0xff]  ;;  %v61_v47 = vld [vmem:[%s5341_s1 + $0x148] sm:$0xff] }
  0x20   :  { %4183 = vmatpush3.msra.mxu0 %v47_v27  ;;  %4194 = vmatpush3.msra.mxu1 %v51_v28  ;;  %v65_v48 = vld [vmem:[%s5341_s1 + $0x168] sm:$0xff]  ;;  %v60_v49 = vld [vmem:[%s5341_s1 + $0x140] sm:$0xff]  ;;  %v71_v51 = vld [vmem:[%s5341_s1 + $0x198] sm:$0xff] }
  0x21   :  { %4184 = vmatprep.subr.mxu0 %v4559_v2  ;;  %4195 = vmatprep.subr.mxu1 %v4559_v2  ;;  %v64_v50 = vld [vmem:[%s5341_s1 + $0x160] sm:$0xff]  ;;  %v75_v52 = vld [vmem:[%s5341_s1 + $0x1b8] sm:$0xff]  ;;  %v70_v53 = vld [vmem:[%s5341_s1 + $0x190] sm:$0xff] }
  0x22   :  { %4185 = vmatpush3.msra.mxu0 %v46_v29  ;;  %4196 = vmatpush3.msra.mxu1 %v50_v30  ;;  %v74_v54 = vld [vmem:[%s5341_s1 + $0x1b0] sm:$0xff]  ;;  %v69_v55 = vld [vmem:[%s5341_s1 + $0x188] sm:$0xff]  ;;  %v68_v57 = vld [vmem:[%s5341_s1 + $0x180] sm:$0xff] }
  0x23   :  { %4186 = vmatprep.subr.mxu0 %v4559_v2  ;;  %4197 = vmatprep.subr.mxu1 %v4559_v2  ;;  %v73_v56 = vld [vmem:[%s5341_s1 + $0x1a8] sm:$0xff]  ;;  %v72_v58 = vld [vmem:[%s5341_s1 + $0x1a0] sm:$0xff]  ;;  %v79_v59 = vld [vmem:[%s5341_s1 + $0x1d8] sm:$0xff] }
  0x24   :  { %4187 = vmatpush3.msra.mxu0 %v45_v31  ;;  %4198 = vmatpush3.msra.mxu1 %v49_v32  ;;  %v83_v60 = vld [vmem:[%s5341_s1 + $0x1f8] sm:$0xff]  ;;  %v78_v61 = vld [vmem:[%s5341_s1 + $0x1d0] sm:$0xff]  ;;  %v77_v63 = vld [vmem:[%s5341_s1 + $0x1c8] sm:$0xff] }
  0x25   :  { %4188 = vmatprep.subr.mxu0 %v4559_v2  ;;  %4199 = vmatprep.subr.mxu1 %v4559_v2  ;;  %v82_v62 = vld [vmem:[%s5341_s1 + $0x1f0] sm:$0xff]  ;;  %v81_v0 = vld [vmem:[%s5341_s1 + $0x1e8] sm:$0xff]  ;;  %v76_v1 = vld [vmem:[%s5341_s1 + $0x1c0] sm:$0xff] }
  0x26   :  { %4189 = vmatpush3.msra.mxu0 %v44_v33  ;;  %4190 = vmatprep.mubr.msk.f32.mxu0 %vm4560_vm1, %v4559_v2  ;;  %v80_v3 = vld [vmem:[%s5341_s1 + $0x1e0] sm:$0xff]  ;;  %v87_v4 = vld [vmem:[%s5341_s1 + $0x218] sm:$0xff]  ;;  %v86_v6 = vld [vmem:[%s5341_s1 + $0x210] sm:$0xff] }
  0x27   :  { %4200 = vmatpush3.msra.mxu1 %v48_v34  ;;  %4191 = vmatmul.mubr.msk.f32.vlgmr.msra.gmra.mxu0 %vm284_vm0, %v4707_v26  ;;  %v91_v5 = vld [vmem:[%s5341_s1 + $0x238] sm:$0xff]  ;;  %v90_v7 = vld [vmem:[%s5341_s1 + $0x230] sm:$0xff]  ;;  %v85_v8 = vld [vmem:[%s5341_s1 + $0x208] sm:$0xff] }
  0x28   :  { %4201 = vmatprep.mubr.msk.f32.mxu1 %vm4560_vm1, %v4559_v2  ;;  %4204 = vmatprep.subr.mxu0 %v4559_v2  ;;  %v89_v10 = vld [vmem:[%s5341_s1 + $0x228] sm:$0xff]  ;;  %v84_v11 = vld [vmem:[%s5341_s1 + $0x200] sm:$0xff]  ;;  %v95_v13 = vld [vmem:[%s5341_s1 + $0x258] sm:$0xff] }
  0x29   :  { %4215 = vmatprep.subr.mxu1 %v4559_v2  ;;  %4202 = vmatmul.mubr.msk.f32.vlgmr.msra.gmra.mxu1 %vm284_vm0, %v4707_v26  ;;  %v88_v12 = vld [vmem:[%s5341_s1 + $0x220] sm:$0xff]  ;;  %v99_v14 = vld [vmem:[%s5341_s1 + $0x278] sm:$0xff]  ;;  %v94_v15 = vld [vmem:[%s5341_s1 + $0x250] sm:$0xff] }
  0x2a   :  { %4205 = vmatpush3.msra.mxu0 %v55_v35  ;;  %4216 = vmatpush3.msra.mxu1 %v59_v36  ;;  %v98_v16 = vld [vmem:[%s5341_s1 + $0x270] sm:$0xff]  ;;  %v93_v17 = vld [vmem:[%s5341_s1 + $0x248] sm:$0xff]  ;;  %v92_v19 = vld [vmem:[%s5341_s1 + $0x240] sm:$0xff] }
  0x2b   :  { %4206 = vmatprep.subr.mxu0 %v4559_v2  ;;  %4217 = vmatprep.subr.mxu1 %v4559_v2  ;;  %v97_v18 = vld [vmem:[%s5341_s1 + $0x268] sm:$0xff]  ;;  %v96_v20 = vld [vmem:[%s5341_s1 + $0x260] sm:$0xff]  ;;  %v103_v21 = vld [vmem:[%s5341_s1 + $0x298] sm:$0xff] }
  0x2c   :  { %4207 = vmatpush3.msra.mxu0 %v54_v37  ;;  %4218 = vmatpush3.msra.mxu1 %v58_v38  ;;  %v107_v22 = vld [vmem:[%s5341_s1 + $0x2b8] sm:$0xff]  ;;  %v102_v23 = vld [vmem:[%s5341_s1 + $0x290] sm:$0xff]  ;;  %v101_v25 = vld [vmem:[%s5341_s1 + $0x288] sm:$0xff] }
  0x2d   :  { %4208 = vmatprep.subr.mxu0 %v4559_v2  ;;  %4219 = vmatprep.subr.mxu1 %v4559_v2  ;;  %v106_v24 = vld [vmem:[%s5341_s1 + $0x2b0] sm:$0xff]  ;;  %v100_v27 = vld [vmem:[%s5341_s1 + $0x280] sm:$0xff]  ;;  %v111_v29 = vld [vmem:[%s5341_s1 + $0x2d8] sm:$0xff] }
  0x2e   :  { %4209 = vmatpush3.msra.mxu0 %v53_v39  ;;  %4220 = vmatpush3.msra.mxu1 %v57_v40  ;;  %v104_v28 = vld [vmem:[%s5341_s1 + $0x2a0] sm:$0xff]  ;;  %v115_v30 = vld [vmem:[%s5341_s1 + $0x2f8] sm:$0xff]  ;;  %v110_v31 = vld [vmem:[%s5341_s1 + $0x2d0] sm:$0xff] }
  0x2f   :  { %4210 = vmatprep.subr.mxu0 %v4559_v2  ;;  %4221 = vmatprep.subr.mxu1 %v4559_v2  ;;  %v114_v32 = vld [vmem:[%s5341_s1 + $0x2f0] sm:$0xff]  ;;  %v109_v33 = vld [vmem:[%s5341_s1 + $0x2c8] sm:$0xff]  ;;  %v108_v35 = vld [vmem:[%s5341_s1 + $0x2c0] sm:$0xff] }
  0x30   :  { %4211 = vmatpush3.msra.mxu0 %v52_v41  ;;  %4212 = vmatprep.mubr.msk.f32.mxu0 %vm4560_vm1, %v4559_v2  ;;  %v113_v34 = vld [vmem:[%s5341_s1 + $0x2e8] sm:$0xff]  ;;  %v112_v36 = vld [vmem:[%s5341_s1 + $0x2e0] sm:$0xff] }
  0x31   :  { %4222 = vmatpush3.msra.mxu1 %v56_v42  ;;  %4223 = vmatprep.mubr.msk.f32.mxu1 %vm4560_vm1, %v4559_v2 }
  0x32   :  { %4213 = vmatmul.mubr.msk.f32.vlgmr.msra.gmra.mxu0 %vm284_vm0, %v4622_v9  ;;  %4224 = vmatmul.mubr.msk.f32.vlgmr.msra.gmra.mxu1 %vm284_vm0, %v4622_v9 }
  0x33   :  { %4226 = vmatprep.subr.mxu0 %v4559_v2  ;;  %4237 = vmatprep.subr.mxu1 %v4559_v2 }
  0x34   :  { %4227 = vmatpush3.msra.mxu0 %v63_v43  ;;  %4238 = vmatpush3.msra.mxu1 %v67_v44 }
  0x35   :  { %4228 = vmatprep.subr.mxu0 %v4559_v2  ;;  %4239 = vmatprep.subr.mxu1 %v4559_v2 }
  0x36   :  { %4229 = vmatpush3.msra.mxu0 %v62_v45  ;;  %4240 = vmatpush3.msra.mxu1 %v66_v46 }
  0x37   :  { %4230 = vmatprep.subr.mxu0 %v4559_v2  ;;  %4241 = vmatprep.subr.mxu1 %v4559_v2 }
  0x38   :  { %4231 = vmatpush3.msra.mxu0 %v61_v47  ;;  %4242 = vmatpush3.msra.mxu1 %v65_v48 }
  0x39   :  { %4232 = vmatprep.subr.mxu0 %v4559_v2  ;;  %4243 = vmatprep.subr.mxu1 %v4559_v2 }
  0x3a   :  { %4233 = vmatpush3.msra.mxu0 %v60_v49  ;;  %4234 = vmatprep.mubr.msk.f32.mxu0 %vm4560_vm1, %v4559_v2 }
  0x3b   :  { %4244 = vmatpush3.msra.mxu1 %v64_v50  ;;  %4245 = vmatprep.mubr.msk.f32.mxu1 %vm4560_vm1, %v4559_v2 }
  0x3c   :  { %4235 = vmatmul.mubr.msk.f32.vlgmr.msra.gmra.mxu0 %vm284_vm0, %v4622_v9  ;;  %4246 = vmatmul.mubr.msk.f32.vlgmr.msra.gmra.mxu1 %vm284_vm0, %v4622_v9 }
  0x3d   :  { %4248 = vmatprep.subr.mxu0 %v4559_v2  ;;  %4259 = vmatprep.subr.mxu1 %v4559_v2 }
  0x3e   :  { %4249 = vmatpush3.msra.mxu0 %v71_v51  ;;  %4260 = vmatpush3.msra.mxu1 %v75_v52  ;;  %v3876_v52 = vld [vmem:[%s5342_s2 + $0x8] ss:$0 sm:$0xff] }
  0x3f   :  { %4250 = vmatprep.subr.mxu0 %v4559_v2  ;;  %4261 = vmatprep.subr.mxu1 %v4559_v2 }
  0x40   :  { %4251 = vmatpush3.msra.mxu0 %v70_v53  ;;  %4262 = vmatpush3.msra.mxu1 %v74_v54  ;;  %v3877_v53 = vld [vmem:[%s5342_s2 + $0x9] ss:$0 sm:$0xff] }
  0x41   :  { %4252 = vmatprep.subr.mxu0 %v4559_v2  ;;  %4263 = vmatprep.subr.mxu1 %v4559_v2 }
  0x42   :  { %4253 = vmatpush3.msra.mxu0 %v69_v55  ;;  %4264 = vmatpush3.msra.mxu1 %v73_v56  ;;  %v3868_v56 = vld [vmem:[%s5342_s2] ss:$0 sm:$0xff] }
  0x43   :  { %4254 = vmatprep.subr.mxu0 %v4559_v2  ;;  %4265 = vmatprep.subr.mxu1 %v4559_v2 }
  0x44   :  { %4255 = vmatpush3.msra.mxu0 %v68_v57  ;;  %4256 = vmatprep.mubr.msk.f32.mxu0 %vm4560_vm1, %v4559_v2  ;;  %v3869_v57 = vld [vmem:[%s5342_s2 + $0x1] ss:$0 sm:$0xff] }
  0x45   :  { %4266 = vmatpush3.msra.mxu1 %v72_v58  ;;  %4267 = vmatprep.mubr.msk.f32.mxu1 %vm4560_vm1, %v4559_v2 }
  0x46   :  { %4257 = vmatmul.mubr.msk.f32.vlgmr.msra.gmra.mxu0 %vm284_vm0, %v4707_v26  ;;  %4268 = vmatmul.mubr.msk.f32.vlgmr.msra.gmra.mxu1 %vm284_vm0, %v4707_v26 }
  0x47   :  { %4270 = vmatprep.subr.mxu0 %v4559_v2  ;;  %4281 = vmatprep.subr.mxu1 %v4559_v2 }
  0x48   :  { %4271 = vmatpush3.msra.mxu0 %v79_v59  ;;  %4282 = vmatpush3.msra.mxu1 %v83_v60 }
  0x49   :  { %4272 = vmatprep.subr.mxu0 %v4559_v2  ;;  %4283 = vmatprep.subr.mxu1 %v4559_v2 }
  0x4a   :  { %4273 = vmatpush3.msra.mxu0 %v78_v61  ;;  %4284 = vmatpush3.msra.mxu1 %v82_v62 }
  0x4b   :  { %4274 = vmatprep.subr.mxu0 %v4559_v2  ;;  %4285 = vmatprep.subr.mxu1 %v4559_v2 }
  0x4c   :  { %4275 = vmatpush3.msra.mxu0 %v77_v63  ;;  %4286 = vmatpush3.msra.mxu1 %v81_v0  ;;  %v3878_v0 = vld [vmem:[%s5342_s2 + $0xa] ss:$0 sm:$0xff] }
  0x4d   :  { %4276 = vmatprep.subr.mxu0 %v4559_v2  ;;  %4287 = vmatprep.subr.mxu1 %v4559_v2 }
  0x4e   :  { %4277 = vmatpush3.msra.mxu0 %v76_v1  ;;  %4278 = vmatprep.mubr.msk.f32.mxu0 %vm4560_vm1, %v4559_v2  ;;  %v3879_v1 = vld [vmem:[%s5342_s2 + $0xb] ss:$0 sm:$0xff] }
  0x4f   :  { %4288 = vmatpush3.msra.mxu1 %v80_v3  ;;  %4289 = vmatprep.mubr.msk.f32.mxu1 %vm4560_vm1, %v4559_v2 }
  0x50   :  { %4279 = vmatmul.mubr.msk.f32.vlgmr.msra.gmra.mxu0 %vm284_vm0, %v4707_v26  ;;  %4290 = vmatmul.mubr.msk.f32.vlgmr.msra.gmra.mxu1 %vm284_vm0, %v4707_v26 }
  0x51   :  { %4292 = vmatprep.subr.mxu0 %v4559_v2  ;;  %4303 = vmatprep.subr.mxu1 %v4559_v2 }
  0x52   :  { %4293 = vmatpush3.msra.mxu0 %v87_v4  ;;  %4304 = vmatpush3.msra.mxu1 %v91_v5  ;;  %v3870_v5 = vld [vmem:[%s5342_s2 + $0x2] ss:$0 sm:$0xff] }
  0x53   :  { %4294 = vmatprep.subr.mxu0 %v4559_v2  ;;  %4305 = vmatprep.subr.mxu1 %v4559_v2 }
  0x54   :  { %4295 = vmatpush3.msra.mxu0 %v86_v6  ;;  %4306 = vmatpush3.msra.mxu1 %v90_v7  ;;  %v3871_v6 = vld [vmem:[%s5342_s2 + $0x3] ss:$0 sm:$0xff] }
  0x55   :  { %4296 = vmatprep.subr.mxu0 %v4559_v2  ;;  %4307 = vmatprep.subr.mxu1 %v4559_v2 }
  0x56   :  { %4297 = vmatpush3.msra.mxu0 %v85_v8  ;;  %4308 = vmatpush3.msra.mxu1 %v89_v10 }
  0x57   :  { %4298 = vmatprep.subr.mxu0 %v4559_v2  ;;  %4309 = vmatprep.subr.mxu1 %v4559_v2 }
  0x58   :  { %4299 = vmatpush3.msra.mxu0 %v84_v11  ;;  %4310 = vmatpush3.msra.mxu1 %v88_v12 }
  0x59   :  { %4300 = vmatprep.mubr.msk.f32.mxu0 %vm4560_vm1, %v4559_v2  ;;  %4311 = vmatprep.mubr.msk.f32.mxu1 %vm4560_vm1, %v4559_v2 }
  0x5a   :  { %4314 = vmatprep.subr.mxu0 %v4559_v2  ;;  %4325 = vmatprep.subr.mxu1 %v4559_v2 }
  0x5b   :  { %4301 = vmatmul.mubr.msk.f32.vlgmr.msra.gmra.mxu0 %vm284_vm0, %v4622_v9  ;;  %4312 = vmatmul.mubr.msk.f32.vlgmr.msra.gmra.mxu1 %vm284_vm0, %v4622_v9 }
  0x5c   :  { %4315 = vmatpush3.msra.mxu0 %v95_v13  ;;  %4326 = vmatpush3.msra.mxu1 %v99_v14  ;;  %v3880_v14 = vld [vmem:[%s5342_s2 + $0xc] ss:$0 sm:$0xff] }
  0x5d   :  { %4316 = vmatprep.subr.mxu0 %v4559_v2  ;;  %4327 = vmatprep.subr.mxu1 %v4559_v2 }
  0x5e   :  { %4317 = vmatpush3.msra.mxu0 %v94_v15  ;;  %4328 = vmatpush3.msra.mxu1 %v98_v16  ;;  %v3881_v15 = vld [vmem:[%s5342_s2 + $0xd] ss:$0 sm:$0xff] }
  0x5f   :  { %4318 = vmatprep.subr.mxu0 %v4559_v2  ;;  %4329 = vmatprep.subr.mxu1 %v4559_v2 }
  0x60   :  { %4319 = vmatpush3.msra.mxu0 %v93_v17  ;;  %4330 = vmatpush3.msra.mxu1 %v97_v18  ;;  %v3872_v18 = vld [vmem:[%s5342_s2 + $0x4] ss:$0 sm:$0xff] }
  0x61   :  { %4320 = vmatprep.subr.mxu0 %v4559_v2  ;;  %4331 = vmatprep.subr.mxu1 %v4559_v2 }
  0x62   :  { %4321 = vmatpush3.msra.mxu0 %v92_v19  ;;  %4332 = vmatpush3.msra.mxu1 %v96_v20  ;;  %v3873_v19 = vld [vmem:[%s5342_s2 + $0x5] ss:$0 sm:$0xff] }
  0x63   :  { %4322 = vmatprep.mubr.msk.f32.mxu0 %vm4560_vm1, %v4559_v2  ;;  %4333 = vmatprep.mubr.msk.f32.mxu1 %vm4560_vm1, %v4559_v2 }
  0x64   :  { %4336 = vmatprep.subr.mxu0 %v4559_v2  ;;  %4347 = vmatprep.subr.mxu1 %v4559_v2 }
  0x65   :  { %4323 = vmatmul.mubr.msk.f32.vlgmr.msra.gmra.mxu0 %vm284_vm0, %v4622_v9  ;;  %4334 = vmatmul.mubr.msk.f32.vlgmr.msra.gmra.mxu1 %vm284_vm0, %v4622_v9  ;;  %v105_v9 = vld [vmem:[%s5341_s1 + $0x2a8] sm:$0xff] }
  0x66   :  { %4337 = vmatpush3.msra.mxu0 %v103_v21  ;;  %4348 = vmatpush3.msra.mxu1 %v107_v22 }
  0x67   :  { %4338 = vmatprep.subr.mxu0 %v4559_v2  ;;  %4349 = vmatprep.subr.mxu1 %v4559_v2 }
  0x68   :  { %4339 = vmatpush3.msra.mxu0 %v102_v23  ;;  %4350 = vmatpush3.msra.mxu1 %v106_v24 }
  0x69   :  { %4340 = vmatprep.subr.mxu0 %v4559_v2  ;;  %4351 = vmatprep.subr.mxu1 %v4559_v2 }
  0x6a   :  { %4341 = vmatpush3.msra.mxu0 %v101_v25  ;;  %4352 = vmatpush3.msra.mxu1 %v105_v9  ;;  %v3882_v9 = vld [vmem:[%s5342_s2 + $0xe] ss:$0 sm:$0xff] }
  0x6b   :  { %4342 = vmatprep.subr.mxu0 %v4559_v2  ;;  %4353 = vmatprep.subr.mxu1 %v4559_v2 }
  0x6c   :  { %4343 = vmatpush3.msra.mxu0 %v100_v27  ;;  %4354 = vmatpush3.msra.mxu1 %v104_v28  ;;  %v3883_v27 = vld [vmem:[%s5342_s2 + $0xf] ss:$0 sm:$0xff] }
  0x6d   :  { %4344 = vmatprep.mubr.msk.f32.mxu0 %vm4560_vm1, %v4559_v2  ;;  %4355 = vmatprep.mubr.msk.f32.mxu1 %vm4560_vm1, %v4559_v2 }
  0x6e   :  { %4358 = vmatprep.subr.mxu0 %v4559_v2  ;;  %4369 = vmatprep.subr.mxu1 %v4559_v2 }
  0x6f   :  { %4345 = vmatmul.mubr.msk.f32.vlgmr.msra.gmra.mxu0 %vm284_vm0, %v4707_v26  ;;  %4356 = vmatmul.mubr.msk.f32.vlgmr.msra.gmra.mxu1 %vm284_vm0, %v4707_v26 }
  0x70   :  { %4359 = vmatpush3.msra.mxu0 %v111_v29  ;;  %4370 = vmatpush3.msra.mxu1 %v115_v30  ;;  %v3874_v30 = vld [vmem:[%s5342_s2 + $0x6] ss:$0 sm:$0xff] }
  0x71   :  { %4360 = vmatprep.subr.mxu0 %v4559_v2  ;;  %4371 = vmatprep.subr.mxu1 %v4559_v2 }
  0x72   :  { %4361 = vmatpush3.msra.mxu0 %v110_v31  ;;  %4372 = vmatpush3.msra.mxu1 %v114_v32  ;;  %v3875_v31 = vld [vmem:[%s5342_s2 + $0x7] ss:$0 sm:$0xff] }
  0x73   :  { %4362 = vmatprep.subr.mxu0 %v4559_v2  ;;  %4373 = vmatprep.subr.mxu1 %v4559_v2 }
  0x74   :  { %4363 = vmatpush3.msra.mxu0 %v109_v33  ;;  %4374 = vmatpush3.msra.mxu1 %v113_v34 }
  0x75   :  { %4364 = vmatprep.subr.mxu0 %v4559_v2  ;;  %4375 = vmatprep.subr.mxu1 %v4559_v2 }
  0x76   :  { %4365 = vmatpush3.msra.mxu0 %v108_v35  ;;  %4366 = vmatprep.mubr.msk.f32.mxu0 %vm4560_vm1, %v4559_v2 }
  0x77   :  { %4376 = vmatpush3.msra.mxu1 %v112_v36  ;;  %4377 = vmatprep.mubr.msk.f32.mxu1 %vm4560_vm1, %v4559_v2 }
  0x78   :  { %4367 = vmatmul.mubr.msk.f32.vlgmr.msra.gmra.mxu0 %vm284_vm0, %v4707_v26  ;;  %4378 = vmatmul.mubr.msk.f32.vlgmr.msra.gmra.mxu1 %vm284_vm0, %v4707_v26 }
  0x79   :  { %4380 = vmatprep.subr.mxu0 %v4559_v2  ;;  %4385 = vmatprep.subr.mxu1 %v4559_v2 }
  0x7a   :  { %4382 = vmatprep.mubr.msk.f32.mxu0 %vm4560_vm1, %v4559_v2  ;;  %4387 = vmatprep.mubr.msk.f32.mxu1 %vm4560_vm1, %v4559_v2 }
  0xc9   :  { %v354_v37 = vpop.f32.mrf.mxu0 }
  0xca   :  { %v355_v62 = vadd.f32 %v3868_v56, %v354_v37 }
  0xcb   :  { %v424_v38 = vpop.f32.mrf.mxu1  ;;  %v4126_v39 = vpop.f32.mrf.mxu0 }
  0xcc   :  { %v425_v63 = vadd.f32 %v3869_v57, %v424_v38  ;;  %v3884_v38 = vld [vmem:[%s5342_s2 + $0x10] ss:$0 sm:$0xff]  ;;  %v3885_v39 = vld [vmem:[%s5342_s2 + $0x11] ss:$0 sm:$0xff] }
  0xcd   :  { %v4137_v40 = vpop.f32.mrf.mxu1 }
  0xd3   :  { %v494_v41 = vpop.f32.mrf.mxu0 }
  0xd4   :  { %v495_v12 = vadd.f32 %v3870_v5, %v494_v41 }
  0xd5   :  { %v564_v42 = vpop.f32.mrf.mxu1  ;;  %v4148_v43 = vpop.f32.mrf.mxu0 }
  0xd6   :  { %v565_v13 = vadd.f32 %v3871_v6, %v564_v42 }
  0xd7   :  { %v4159_v44 = vpop.f32.mrf.mxu1 }
  0xdd   :  { %v637_v45 = vpop.f32.mrf.mxu0 }
  0xde   :  { %v638_v24 = vadd.f32 %v3872_v18, %v637_v45 }
  0xdf   :  { %v707_v26 = vpop.f32.mrf.mxu1  ;;  %v4170_v46 = vpop.f32.mrf.mxu0 }
  0xe0   :  { %v708_v25 = vadd.f32 %v3873_v19, %v707_v26 }
  0xe1   :  { %v4181_v47 = vpop.f32.mrf.mxu1 }
  0xe7   :  { %v5085_v48 = vpop.f32.mrf.mxu0 }
  0xe8   :  { %v778_v36 = vadd.f32 %v3874_v30, %v5085_v48 }
  0xe9   :  { %v5087_v49 = vpop.f32.mrf.mxu1  ;;  %v4192_v50 = vpop.f32.mrf.mxu0 }
  0xea   :  { %v848_v37 = vadd.f32 %v3875_v31, %v5087_v49 }
  0xeb   :  { %v4203_v51 = vpop.f32.mrf.mxu1 }
  0xf2   :  { %v917_v54 = vpop.f32.mrf.mxu0  ;;  %v987_v55 = vpop.f32.mrf.mxu1 }
  0xf3   :  { %v918_v58 = vadd.f32 %v3876_v52, %v917_v54  ;;  %v988_v59 = vadd.f32 %v3877_v53, %v987_v55 }
  0xf4   :  { %v4214_v60 = vpop.f32.mrf.mxu0  ;;  %v4225_v61 = vpop.f32.mrf.mxu1 }
  0xf5   :  { %4381 = vmatpush3.xpose.msk.msra.mxu0 %vm1971_vm2, %v918_v58  ;;  %4386 = vmatpush3.xpose.msk.msra.mxu1 %vm1971_vm2, %v988_v59 }
  0xf6   :  { %4390 = vmatprep.subr.mxu0 %v4559_v2  ;;  %4395 = vmatprep.subr.mxu1 %v4559_v2 }
  0xf8   :  { %4383 = vmatmul.mubr.msk.f32.vlgmr.msra.gmra.mxu0 %vm1971_vm2, %v355_v62  ;;  %4388 = vmatmul.mubr.msk.f32.vlgmr.msra.gmra.mxu1 %vm1971_vm2, %v425_v63 }
  0xf9   :  { %4392 = vmatprep.mubr.msk.f32.mxu0 %vm4560_vm1, %v4559_v2  ;;  %4397 = vmatprep.mubr.msk.f32.mxu1 %vm4560_vm1, %v4559_v2 }
  0xfc   :  { %v1057_v3 = vpop.f32.mrf.mxu0  ;;  %v1127_v4 = vpop.f32.mrf.mxu1 }
  0xfd   :  { %v1058_v7 = vadd.f32 %v3878_v0, %v1057_v3  ;;  %v1128_v8 = vadd.f32 %v3879_v1, %v1127_v4 }
  0xfe   :  { %v4236_v10 = vpop.f32.mrf.mxu0  ;;  %v4247_v11 = vpop.f32.mrf.mxu1 }
  0xff   :  { %4391 = vmatpush3.xpose.msk.msra.mxu0 %vm1971_vm2, %v1058_v7  ;;  %4396 = vmatpush3.xpose.msk.msra.mxu1 %vm1971_vm2, %v1128_v8 }
 0x100   :  { %4400 = vmatprep.subr.mxu0 %v4559_v2  ;;  %4405 = vmatprep.subr.mxu1 %v4559_v2 }
 0x102   :  { %4393 = vmatmul.mubr.msk.f32.vlgmr.msra.gmra.mxu0 %vm1971_vm2, %v495_v12  ;;  %4398 = vmatmul.mubr.msk.f32.vlgmr.msra.gmra.mxu1 %vm1971_vm2, %v565_v13 }
 0x103   :  { %4402 = vmatprep.mubr.msk.f32.mxu0 %vm4560_vm1, %v4559_v2  ;;  %4407 = vmatprep.mubr.msk.f32.mxu1 %vm4560_vm1, %v4559_v2 }
 0x106   :  { %v1197_v16 = vpop.f32.mrf.mxu0  ;;  %v1267_v17 = vpop.f32.mrf.mxu1 }
 0x107   :  { %v1198_v20 = vadd.f32 %v3880_v14, %v1197_v16  ;;  %v1268_v21 = vadd.f32 %v3881_v15, %v1267_v17 }
 0x108   :  { %v4258_v22 = vpop.f32.mrf.mxu0  ;;  %v4269_v23 = vpop.f32.mrf.mxu1 }
 0x109   :  { %4401 = vmatpush3.xpose.msk.msra.mxu0 %vm1971_vm2, %v1198_v20  ;;  %4406 = vmatpush3.xpose.msk.msra.mxu1 %vm1971_vm2, %v1268_v21 }
 0x10a   :  { %4410 = vmatprep.subr.mxu0 %v4559_v2  ;;  %4415 = vmatprep.subr.mxu1 %v4559_v2 }
 0x10c   :  { %4403 = vmatmul.mubr.msk.f32.vlgmr.msra.gmra.mxu0 %vm1971_vm2, %v638_v24  ;;  %4408 = vmatmul.mubr.msk.f32.vlgmr.msra.gmra.mxu1 %vm1971_vm2, %v708_v25 }
 0x10d   :  { %4412 = vmatprep.mubr.msk.f32.mxu0 %vm4560_vm1, %v4559_v2  ;;  %4417 = vmatprep.mubr.msk.f32.mxu1 %vm4560_vm1, %v4559_v2 }
 0x110   :  { %v1337_v28 = vpop.f32.mrf.mxu0  ;;  %v1407_v29 = vpop.f32.mrf.mxu1 }
 0x111   :  { %v1338_v32 = vadd.f32 %v3882_v9, %v1337_v28  ;;  %v1408_v33 = vadd.f32 %v3883_v27, %v1407_v29 }
 0x112   :  { %v4280_v34 = vpop.f32.mrf.mxu0  ;;  %v4291_v35 = vpop.f32.mrf.mxu1 }
 0x113   :  { %4411 = vmatpush3.xpose.msk.msra.mxu0 %vm1971_vm2, %v1338_v32  ;;  %4416 = vmatpush3.xpose.msk.msra.mxu1 %vm1971_vm2, %v1408_v33 }
 0x114   :  { %4420 = vmatprep.subr.mxu0 %v4559_v2  ;;  %4425 = vmatprep.subr.mxu1 %v4559_v2 }
 0x116   :  { %4413 = vmatmul.mubr.msk.f32.vlgmr.msra.gmra.mxu0 %vm1971_vm2, %v778_v36  ;;  %4418 = vmatmul.mubr.msk.f32.vlgmr.msra.gmra.mxu1 %vm1971_vm2, %v848_v37 }
 0x117   :  { %4422 = vmatprep.mubr.msk.f32.mxu0 %vm4560_vm1, %v4559_v2  ;;  %4427 = vmatprep.mubr.msk.f32.mxu1 %vm4560_vm1, %v4559_v2 }
 0x11b   :  { %v1477_v40 = vpop.f32.mrf.mxu0  ;;  %v1547_v41 = vpop.f32.mrf.mxu1 }
 0x11c   :  { %v1478_v42 = vadd.f32 %v3884_v38, %v1477_v40  ;;  %v1548_v43 = vadd.f32 %v3885_v39, %v1547_v41 }
 0x11d   :  { %v4302_v44 = vpop.f32.mrf.mxu0  ;;  %v4313_v45 = vpop.f32.mrf.mxu1 }
 0x11e   :  { %4421 = vmatpush3.msra.mxu0 %v1478_v42  ;;  %4426 = vmatpush3.msra.mxu1 %v1548_v43 }
 0x11f   :  { %4430 = vmatprep.subr.mxu0 %v4559_v2  ;;  %4435 = vmatprep.subr.mxu1 %v4559_v2 }
 0x125   :  { %v5187_v26 = vpop.f32.mrf.mxu0  ;;  %v5189_v46 = vpop.f32.mrf.mxu1 }
 0x127   :  { %v4324_v47 = vpop.f32.mrf.mxu0  ;;  %v4335_v48 = vpop.f32.mrf.mxu1 }
 0x12f   :  { %v5191_v49 = vpop.f32.mrf.mxu0  ;;  %v5193_v50 = vpop.f32.mrf.mxu1 }
 0x131   :  { %v4346_v51 = vpop.f32.mrf.mxu0  ;;  %v4357_v52 = vpop.f32.mrf.mxu1 }
 0x138   :  { %v5195_v53 = vpop.f32.mrf.mxu0  ;;  %v5197_v54 = vpop.f32.mrf.mxu1 }
 0x13a   :  { %v4368_v55 = vpop.f32.mrf.mxu0  ;;  %v4379_v56 = vpop.f32.mrf.mxu1 }
 0x1b8   :  { %v2044_v57 = vpop.f32.mrf.mxu0  ;;  %v2120_v58 = vpop.f32.mrf.mxu1 }
 0x1b9   :  { %v2580_v59 = vsel %vm1971_vm2, %v2044_v57, -inf  ;;  %v2583_v62 = vsel %vm1971_vm2, %v2120_v58, -inf }
 0x1ba   :  { %v4389_v60 = vpop.f32.mrf.mxu1  ;;  %2581 = vmax.xlane.f32.xlu0 %v2580_v59  ;;  %v4384_v61 = vpop.f32.mrf.mxu0 }
 0x1be   :  { %2584 = vmax.xlane.f32.xlu0 %v2583_v62 }
 0x1c2   :  { %v2196_v63 = vpop.f32.mrf.mxu0  ;;  %v2272_v0 = vpop.f32.mrf.mxu1 }
 0x1c3   :  { %v2586_v1 = vsel %vm1971_vm2, %v2196_v63, -inf  ;;  %v2589_v5 = vsel %vm1971_vm2, %v2272_v0, -inf }
 0x1c4   :  { %v4399_v3 = vpop.f32.mrf.mxu1  ;;  %2587 = vmax.xlane.f32.xlu1 %v2586_v1  ;;  %v4394_v4 = vpop.f32.mrf.mxu0 }
 0x1c5   :  { %v3886_v4 = vld [vmem:[%s5342_s2 + $0x12] ss:$0 sm:$0xff] }
 0x1c8   :  { %2590 = vmax.xlane.f32.xlu1 %v2589_v5 }
 0x1cc   :  { %v2348_v6 = vpop.f32.mrf.mxu0  ;;  %v2424_v7 = vpop.f32.mrf.mxu1 }
 0x1cd   :  { %v2595_v8 = vsel %vm1971_vm2, %v2424_v7, -inf  ;;  %v2592_v10 = vsel %vm1971_vm2, %v2348_v6, -inf }
 0x1ce   :  { %v4409_v11 = vpop.f32.mrf.mxu1  ;;  %2596 = vmax.xlane.f32.xlu1 %v2595_v8  ;;  %2593 = vmax.xlane.f32.xlu0 %v2592_v10  ;;  %v4404_v12 = vpop.f32.mrf.mxu0  ;;  %v1618_v8 = vadd.f32 %v3886_v4, %v5187_v26  ;;  %v3887_v10 = vld [vmem:[%s5342_s2 + $0x13] ss:$0 sm:$0xff]  ;;  %v3888_v26 = vld [vmem:[%s5342_s2 + $0x14] ss:$0 sm:$0xff] }
 0x1d6   :  { %v2500_v13 = vpop.f32.mrf.mxu0  ;;  %v2576_v14 = vpop.f32.mrf.mxu1 }
 0x1d7   :  { %v2601_v15 = vsel %vm1971_vm2, %v2576_v14, -inf  ;;  %v2598_v16 = vsel %vm1971_vm2, %v2500_v13, -inf }
 0x1d8   :  { %v4419_v17 = vpop.f32.mrf.mxu1  ;;  %2602 = vmax.xlane.f32.xlu1 %v2601_v15  ;;  %2599 = vmax.xlane.f32.xlu0 %v2598_v16  ;;  %v4414_v18 = vpop.f32.mrf.mxu0 }
 0x1d9   :  { %v3889_v18 = vld [vmem:[%s5342_s2 + $0x15] ss:$0 sm:$0xff] }
 0x243   :  { %v2582_v19 = vpop.xlane.xlu0 %2581 }
 0x244   :  { %v2604_v20 = vsub.f32 %v2044_v57, %v2582_v19 }
 0x246   :  { %v2612_v21 = vmul.f32 1.442695, %v2604_v20 }
 0x247   :  { %v2585_v22 = vpop.xlane.xlu0 %2584 }
 0x248   :  { %4505 = vpow2.f32 %v2612_v21  ;;  %v2605_v23 = vsub.f32 %v2120_v58, %v2585_v22  ;;  %v1828_v21 = vadd.f32 %v3889_v18, %v5193_v50  ;;  %v3890_v50 = vld [vmem:[%s5342_s2 + $0x16] ss:$0 sm:$0xff] }
 0x24a   :  { %v2614_v24 = vmul.f32 1.442695, %v2605_v23 }
 0x24c   :  { %4507 = vpow2.f32 %v2614_v24 }
 0x24d   :  { %v2588_v25 = vpop.xlane.xlu1 %2587 }
 0x24e   :  { %v2606_v9 = vsub.f32 %v2196_v63, %v2588_v25 }
 0x250   :  { %v2616_v27 = vmul.f32 1.442695, %v2606_v9 }
 0x251   :  { %v2591_v28 = vpop.xlane.xlu1 %2590 }
 0x252   :  { %4509 = vpow2.f32 %v2616_v27  ;;  %v2607_v29 = vsub.f32 %v2272_v0, %v2591_v28 }
 0x254   :  { %v2618_v30 = vmul.f32 1.442695, %v2607_v29  ;;  %v1898_v29 = vadd.f32 %v3890_v50, %v5195_v53 }
 0x255   :  { %v4506_v31 = vpop.eup %4505 }
 0x256   :  { %4511 = vpow2.f32 %v2618_v30  ;;  %v2628_v32 = vsel %vm1971_vm2, %v4506_v31, 0.0 }
 0x257   :  { %v2597_v33 = vpop.xlane.xlu1 %2596  ;;  %v2594_v34 = vpop.xlane.xlu0 %2593  ;;  %2629 = vadd.xlane.f32.xlu0 %v2628_v32  ;;  %v3252_v32 = vld [vmem:[%s5343_s3] sm:$0xff] }
 0x258   :  { %v2609_v35 = vsub.f32 %v2424_v7, %v2597_v33  ;;  %v2608_v36 = vsub.f32 %v2348_v6, %v2594_v34  ;;  %v3253_v33 = vld [vmem:[%s5343_s3 + $0x8] sm:$0xff]  ;;  %v3254_v34 = vld [vmem:[%s5343_s3 + $0x10] sm:$0xff] }
 0x259   :  { %v4508_v37 = vpop.eup %4507 }
 0x25a   :  { %v2622_v38 = vmul.f32 1.442695, %v2609_v35  ;;  %v2620_v39 = vmul.f32 1.442695, %v2608_v36  ;;  %v2631_v40 = vsel %vm1971_vm2, %v4508_v37, 0.0 }
 0x25b   :  { %2632 = vadd.xlane.f32.xlu1 %v2631_v40  ;;  %v3256_v40 = vld [vmem:[%s5343_s3 + $0x20] sm:$0xff] }
 0x25c   :  { %4513 = vpow2.f32 %v2622_v38 }
 0x25d   :  { %4515 = vpow2.f32 %v2620_v39 }
 0x25f   :  { %v4510_v41 = vpop.eup %4509 }
 0x260   :  { %v2634_v42 = vsel %vm1971_vm2, %v4510_v41, 0.0 }
 0x261   :  { %v2603_v43 = vpop.xlane.xlu1 %2602  ;;  %v2600_v44 = vpop.xlane.xlu0 %2599  ;;  %2635 = vadd.xlane.f32.xlu0 %v2634_v42 }
 0x262   :  { %v2611_v45 = vsub.f32 %v2576_v14, %v2603_v43  ;;  %v2610_v47 = vsub.f32 %v2500_v13, %v2600_v44  ;;  %v1688_v13 = vadd.f32 %v3887_v10, %v5189_v46  ;;  %v1758_v46 = vadd.f32 %v3888_v26, %v5191_v49  ;;  %v3891_v49 = vld [vmem:[%s5342_s2 + $0x17] ss:$0 sm:$0xff]  ;;  %v3257_v43 = vld [vmem:[%s5343_s3 + $0x28] sm:$0xff] }
 0x263   :  { %v4512_v48 = vpop.eup %4511  ;;  %v1968_v27 = vadd.f32 %v3891_v49, %v5197_v54 }
 0x264   :  { %v2626_v51 = vmul.f32 1.442695, %v2611_v45  ;;  %v2624_v52 = vmul.f32 1.442695, %v2610_v47  ;;  %v2637_v55 = vsel %vm1971_vm2, %v4512_v48, 0.0  ;;  %v3259_v47 = vld [vmem:[%s5343_s3 + $0x38] sm:$0xff] }
 0x265   :  { %2638 = vadd.xlane.f32.xlu1 %v2637_v55 }
 0x266   :  { %4517 = vpow2.f32 %v2626_v51  ;;  %v3258_v51 = vld [vmem:[%s5343_s3 + $0x30] sm:$0xff] }
 0x267   :  { %4519 = vpow2.f32 %v2624_v52 }
 0x269   :  { %v5211_v56 = vpop.eup %4513 }
 0x26a   :  { %v5213_v57 = vpop.eup %4515  ;;  %v2643_v58 = vsel %vm1971_vm2, %v5211_v56, 0.0 }
 0x26b   :  { %2644 = vadd.xlane.f32.xlu1 %v2643_v58  ;;  %v2640_v59 = vsel %vm1971_vm2, %v5213_v57, 0.0 }
 0x26c   :  { %2641 = vadd.xlane.f32.xlu0 %v2640_v59 }
 0x273   :  { %v5219_v60 = vpop.eup %4517 }
 0x274   :  { %v5221_v61 = vpop.eup %4519  ;;  %v2649_v62 = vsel %vm1971_vm2, %v5219_v60, 0.0 }
 0x275   :  { %2650 = vadd.xlane.f32.xlu1 %v2649_v62  ;;  %v2646_v63 = vsel %vm1971_vm2, %v5221_v61, 0.0 }
 0x276   :  { %2647 = vadd.xlane.f32.xlu0 %v2646_v63 }
 0x2e0   :  { %v2630_v0 = vpop.xlane.xlu0 %2629 }
 0x2e1   :  { %4521 = vrcp.f32 %v2630_v0 }
 0x2e4   :  { %v2633_v1 = vpop.xlane.xlu1 %2632 }
 0x2e5   :  { %4523 = vrcp.f32 %v2633_v1 }
 0x2ea   :  { %v2636_v3 = vpop.xlane.xlu0 %2635 }
 0x2eb   :  { %4525 = vrcp.f32 %v2636_v3 }
 0x2ee   :  { %v4522_v5 = vpop.eup %4521  ;;  %v2639_v6 = vpop.xlane.xlu1 %2638 }
 0x2ef   :  { %4527 = vrcp.f32 %v2639_v6  ;;  %v2660_v7 = vmul.f32 %v4522_v5, %v4506_v31 }
 0x2f1   :  { %4423 = vmatmul.mubr.msk.f32.vlgmr.msra.gmra.mxu0 %vm1971_vm2, %v2660_v7 }
 0x2f2   :  { %v4524_v11 = vpop.eup %4523  ;;  %4431 = vmatpush3.msra.mxu0 %v1618_v8  ;;  %4432 = vmatprep.mubr.msk.f32.mxu0 %vm4560_vm1, %v4559_v2 }
 0x2f3   :  { %v2661_v12 = vmul.f32 %v4524_v11, %v4508_v37  ;;  %4440 = vmatprep.subr.mxu0 %v4559_v2  ;;  %v3255_v37 = vld [vmem:[%s5343_s3 + $0x18] sm:$0xff]  ;;  %s4561_s3 = smov [#allocation2]  }
 0x2f4   :  { %v2645_v14 = vpop.xlane.xlu1 %2644  ;;  %s3857_s29 = sshll.u32 %s4561_s3, 4  ;;  %s3858_s29 = int_to_ptr.vmem [resolvable:$true] %s3857_s29 }
 0x2f5   :  { %4529 = vrcp.f32 %v2645_v14  ;;  %v2642_v15 = vpop.xlane.xlu0 %2641  ;;  %4428 = vmatmul.mubr.msk.f32.vlgmr.msra.gmra.mxu1 %vm1971_vm2, %v2661_v12  ;;  %s4537_s30 = scalar_lea.vmem %s3858_s29, 256  ;;  %p4542_p1 = scmp.lt.s32.totalorder %s3858_s29, %s3858_s29 }
 0x2f6   :  { %4531 = vrcp.f32 %v2642_v15  ;;  %4436 = vmatpush3.msra.mxu1 %v1688_v13  ;;  %4437 = vmatprep.mubr.msk.f32.mxu1 %vm4560_vm1, %v4559_v2  ;;  %p4538_p0 = scmp.ne.s32.totalorder %s3858_s29, %s4537_s30  ;;  %p4543_p2 = scmp.lt.s32.totalorder %s4537_s30, %s4537_s30 }
 0x2f7   :  { %4445 = vmatprep.subr.mxu1 %v4559_v2 }
 0x2f8   :  { %v4526_v16 = vpop.eup %4525  ;;  %p4544_p3 = por %p4543_p2, %p4542_p1 }
 0x2f9   :  { %v2662_v17 = vmul.f32 %v4526_v16, %v4510_v41 }
 0x2fa   :  { %p4545_p4 = pnand %p4544_p3, %p4538_p0 }
 0x2fb   :  { %4433 = vmatmul.mubr.msk.f32.vlgmr.msra.gmra.mxu0 %vm1971_vm2, %v2662_v17 }
 0x2fc   :  { %v4528_v19 = vpop.eup %4527  ;;  %4441 = vmatpush3.msra.mxu0 %v1758_v46  ;;  %4442 = vmatprep.mubr.msk.f32.mxu0 %vm4560_vm1, %v4559_v2 }
 0x2fd   :  { %v2663_v20 = vmul.f32 %v4528_v19, %v4512_v48  ;;  %4450 = vmatprep.subr.mxu0 %v4559_v2 }
 0x2fe   :  { %v2651_v22 = vpop.xlane.xlu1 %2650 }
 0x2ff   :  { %4533 = vrcp.f32 %v2651_v22  ;;  %v2648_v23 = vpop.xlane.xlu0 %2647  ;;  %4438 = vmatmul.mubr.msk.f32.vlgmr.msra.gmra.mxu1 %vm1971_vm2, %v2663_v20 }
 0x300   :  { %4535 = vrcp.f32 %v2648_v23  ;;  %4446 = vmatpush3.msra.mxu1 %v1828_v21  ;;  %4447 = vmatprep.mubr.msk.f32.mxu1 %vm4560_vm1, %v4559_v2 }
 0x301   :  { %4455 = vmatprep.subr.mxu1 %v4559_v2 }
 0x302   :  { %v4530_v24 = vpop.eup %4529 }
 0x303   :  { %v4532_v25 = vpop.eup %4531  ;;  %v2665_v9 = vmul.f32 %v4530_v24, %v5211_v56 }
 0x304   :  { %v2664_v28 = vmul.f32 %v4532_v25, %v5213_v57 }
 0x305   :  { %4448 = vmatmul.mubr.msk.f32.vlgmr.msra.gmra.mxu1 %vm1971_vm2, %v2665_v9 }
 0x306   :  { %4443 = vmatmul.mubr.msk.f32.vlgmr.msra.gmra.mxu0 %vm1971_vm2, %v2664_v28  ;;  %4456 = vmatpush3.msra.mxu1 %v1968_v27 }
 0x307   :  { %4451 = vmatpush3.msra.mxu0 %v1898_v29  ;;  %4452 = vmatprep.mubr.msk.f32.mxu0 %vm4560_vm1, %v4559_v2 }
 0x308   :  { %4457 = vmatprep.mubr.msk.f32.mxu1 %vm4560_vm1, %v4559_v2  ;;  %4460 = vmatprep.subr.mxu0 %v4559_v2 }
 0x309   :  { %4465 = vmatprep.subr.mxu1 %v4559_v2 }
 0x30c   :  { %v4534_v54 = vpop.eup %4533 }
 0x30d   :  { %v4536_v30 = vpop.eup %4535  ;;  %v2667_v53 = vmul.f32 %v4534_v54, %v5219_v60 }
 0x30e   :  { %v2666_v31 = vmul.f32 %v4536_v30, %v5221_v61 }
 0x30f   :  { %4458 = vmatmul.mubr.msk.f32.vlgmr.msra.gmra.mxu1 %vm1971_vm2, %v2667_v53 }
 0x310   :  { %4453 = vmatmul.mubr.msk.f32.vlgmr.msra.gmra.mxu0 %vm1971_vm2, %v2666_v31  ;;  %4467 = vmatprep.mubr.msk.f32.mxu1 %vm4560_vm1, %v4559_v2 }
 0x311   :  { %4462 = vmatprep.mubr.msk.f32.mxu0 %vm4560_vm1, %v4559_v2  ;;  %4461 = vmatpush3.msra.mxu0 %v3252_v32 }
 0x312   :  { %4470 = vmatprep.subr.mxu0 %v4559_v2  ;;  %4466 = vmatpush3.msra.mxu1 %v3253_v33 }
 0x313   :  { %4475 = vmatprep.subr.mxu1 %v4559_v2 }
 0x3b1   :  { %v2737_v35 = vpop.f32.mrf.mxu0 }
 0x3b2   :  { %4463 = vmatmul.mubr.msk.f32.vlgmr.msra.gmra.mxu0 %vm1971_vm2, %v2737_v35 }
 0x3b3   :  { %v4424_v36 = vpop.f32.mrf.mxu0  ;;  %4471 = vmatpush3.msra.mxu0 %v3254_v34  ;;  %4472 = vmatprep.mubr.msk.f32.mxu0 %vm4560_vm1, %v4559_v2 }
 0x3b4   :  { %4480 = vmatprep.subr.mxu0 %v4559_v2 }
 0x3b5   :  { %v2810_v38 = vpop.f32.mrf.mxu1 }
 0x3b6   :  { %4468 = vmatmul.mubr.msk.f32.vlgmr.msra.gmra.mxu1 %vm1971_vm2, %v2810_v38 }
 0x3b7   :  { %v4429_v39 = vpop.f32.mrf.mxu1  ;;  %4476 = vmatpush3.msra.mxu1 %v3255_v37  ;;  %4477 = vmatprep.mubr.msk.f32.mxu1 %vm4560_vm1, %v4559_v2 }
 0x3b8   :  { %4485 = vmatprep.subr.mxu1 %v4559_v2 }
 0x3bb   :  { %v2883_v41 = vpop.f32.mrf.mxu0 }
 0x3bc   :  { %4473 = vmatmul.mubr.msk.f32.vlgmr.msra.gmra.mxu0 %vm1971_vm2, %v2883_v41 }
 0x3bd   :  { %v4434_v42 = vpop.f32.mrf.mxu0  ;;  %4481 = vmatpush3.msra.mxu0 %v3256_v40  ;;  %4482 = vmatprep.mubr.msk.f32.mxu0 %vm4560_vm1, %v4559_v2 }
 0x3be   :  { %4490 = vmatprep.subr.mxu0 %v4559_v2 }
 0x3bf   :  { %v2956_v44 = vpop.f32.mrf.mxu1 }
 0x3c0   :  { %4478 = vmatmul.mubr.msk.f32.vlgmr.msra.gmra.mxu1 %vm1971_vm2, %v2956_v44 }
 0x3c1   :  { %v4439_v45 = vpop.f32.mrf.mxu1  ;;  %4486 = vmatpush3.msra.mxu1 %v3257_v43  ;;  %4487 = vmatprep.mubr.msk.f32.mxu1 %vm4560_vm1, %v4559_v2 }
 0x3c2   :  { %4495 = vmatprep.subr.mxu1 %v4559_v2 }
 0x3c5   :  { %v3102_v48 = vpop.f32.mrf.mxu1 }
 0x3c6   :  { %v3029_v52 = vpop.f32.mrf.mxu0  ;;  %4488 = vmatmul.mubr.msk.f32.vlgmr.msra.gmra.mxu1 %vm1971_vm2, %v3102_v48 }
 0x3c7   :  { %4483 = vmatmul.mubr.msk.f32.vlgmr.msra.gmra.mxu0 %vm1971_vm2, %v3029_v52  ;;  %v4449_v55 = vpop.f32.mrf.mxu1  ;;  %4496 = vmatpush3.msra.mxu1 %v3259_v47 }
 0x3c8   :  { %v4444_v56 = vpop.f32.mrf.mxu0  ;;  %4491 = vmatpush3.msra.mxu0 %v3258_v51  ;;  %4492 = vmatprep.mubr.msk.f32.mxu0 %vm4560_vm1, %v4559_v2 }
 0x3c9   :  { %4497 = vmatprep.mubr.msk.f32.mxu1 %vm4560_vm1, %v4559_v2 }
 0x3cf   :  { %v3248_v57 = vpop.f32.mrf.mxu1 }
 0x3d0   :  { %v3175_v58 = vpop.f32.mrf.mxu0  ;;  %4498 = vmatmul.mubr.msk.f32.vlgmr.msra.gmra.mxu1 %vm1971_vm2, %v3248_v57 }
 0x3d1   :  { %4493 = vmatmul.mubr.msk.f32.vlgmr.msra.gmra.mxu0 %vm1971_vm2, %v3175_v58  ;;  %v4459_v59 = vpop.f32.mrf.mxu1 }
 0x3d2   :  { %v4454_v60 = vpop.f32.mrf.mxu0 }
 0x472   :  { %v3329_v61 = vpop.f32.mrf.mxu0 }
 0x474   :  { %v4464_v62 = vpop.f32.mrf.mxu0 }
 0x476   :  { %v3402_v63 = vpop.f32.mrf.mxu1 }
 0x477   :  { %v3844_v3 = vadd.f32 %v3402_v63, %v3329_v61 }
 0x478   :  { %v4469_v0 = vpop.f32.mrf.mxu1 }
 0x47c   :  { %v3475_v1 = vpop.f32.mrf.mxu0 }
 0x47d   :  { %v3846_v5 = vadd.f32 %v3844_v3, %v3475_v1 }
 0x47e   :  { %v4474_v4 = vpop.f32.mrf.mxu0 }
 0x480   :  { %v3548_v6 = vpop.f32.mrf.mxu1 }
 0x481   :  { %v3848_v7 = vadd.f32 %v3846_v5, %v3548_v6 }
 0x482   :  { %v4479_v8 = vpop.f32.mrf.mxu1 }
 0x483   :  { %3850 = vst.msk [vmem:[#allocation2] sm:$0xff] %vm284_vm0, %v3848_v7 }
 0x486   :  { %v3694_v2 = vpop.f32.mrf.mxu1 }
 0x487   :  { %v3621_v10 = vpop.f32.mrf.mxu0 }
 0x488   :  { %v4489_v11 = vpop.f32.mrf.mxu1  ;;  %v3845_v13 = vadd.f32 %v3694_v2, %v3621_v10 }
 0x489   :  { %v4484_v12 = vpop.f32.mrf.mxu0 }
 0x490   :  { %v3840_v14 = vpop.f32.mrf.mxu1 }
 0x491   :  { %v3767_v15 = vpop.f32.mrf.mxu0 }
 0x492   :  { %v3847_v26 = vadd.f32 %v3845_v13, %v3767_v15  ;;  %v4499_v16 = vpop.f32.mrf.mxu1 }
 0x493   :  { %v4494_v17 = vpop.f32.mrf.mxu0 }
 0x494   :  { %v3849_v46 = vadd.f32 %v3847_v26, %v3840_v14 }
 0x496   :  { %3851 = vst.msk [vmem:[#allocation2 + $0x8] sm:$0xff] %vm284_vm0, %v3849_v46 }
 0x497   :  { %4548 = shalt.err (!%p4545_p4)
}
 0x498   :  { %s4562_s5 = smov 128   ;;  %s4563_s6 = smov 8  }
 0x499   :  { %3863 = dma.vmem_to_hbm [thread:$0]  %s3858_s29, 256, %s5344_s4, [#allocation3], %s4562_s5, %s4562_s5, %s4563_s6  }
 0x49a   :  { %4557 = dma.done.wait [#allocation3], 256  }
 0x49b   :  { %4558 = vsyncadd [#allocation3], 4294967040 }
 0x49c   :  { %3867 = vsyncpa [#allocation3], 1 }

</bundles_post_ra>
